<compile_context>
chip_gen: v7x
topology: tpu7x:2x2x1
jax: 0.10.0
libtpu: 0.0.40
codegen_flags: <defaults>
</compile_context>

<pallas_src>
import math

import jax
import jax.numpy as jnp
import numpy as np
from jax.experimental import pallas as pl
from jax.experimental.pallas import tpu as pltpu

# ---- model dimensions -------------------------------------------------------
D_MAIN = 32
D_BLOCK = 64            # int(d_main * d_multiplier), d_multiplier = 2.0
N_NUM = 8
N_CAT = 4
D_IN = N_NUM + N_CAT    # num_embeddings is None
N_CLASSES = 3
CONTEXT_SIZE = 8
LN_EPS = 1e-5

SLAB_W = 128            # lane-dense weight-slab width
HEAD_W = 128            # lane-dense (padded) logits width

# ---- encoder weight-slab row layout (matrix starts are multiples of 16 so the
# ---- bf16 sublane packing stays aligned; vector rows are stride-2 for the same
# ---- reason) -----------------------------------------------------------------
ENC_W_LIN = 0           # (D_IN, D_MAIN)
ENC_B0_W0 = 16          # (D_MAIN, D_BLOCK)
ENC_B0_W1 = 48          # (D_BLOCK, D_MAIN)
ENC_B1_W0 = 112         # (D_MAIN, D_BLOCK)
ENC_B1_W1 = 144         # (D_BLOCK, D_MAIN)
ENC_WK = 208            # (D_MAIN, D_MAIN)
ENC_VEC = 240           # 10 bias / LN-param rows, stride 2
ENC_ROWS = 272

# ---- mixer/predictor weight-slab row layout ----------------------------------
MIX_WT0 = 0             # (D_MAIN, D_BLOCK)
MIX_WT1 = 32            # (D_BLOCK, D_MAIN)
MIX_PW0 = 96            # (D_MAIN, D_BLOCK)
MIX_PW1 = 128           # (D_BLOCK, D_MAIN)
MIX_WHEAD = 192         # (D_MAIN, HEAD_W)  cols >= N_CLASSES are zero padding
MIX_VEC = 224           # 8 bias / LN-param rows, stride 2
MIX_ROWS = 240


# ---- small helpers shared by kernel bodies and the pure-JAX reference -------
def _ln(z, w, b):
    mu = jnp.mean(z, axis=-1, keepdims=True)
    var = jnp.mean(jnp.square(z - mu), axis=-1, keepdims=True)
    return (z - mu) * jax.lax.rsqrt(var + LN_EPS) * w + b


def _mm(a, b):
    return jnp.dot(a, b, preferred_element_type=jnp.float32)


def _mxu(a, w_bf16):
    # bf16 MXU operands, f32 accumulation; elementwise math elsewhere stays f32.
    return jnp.dot(a.astype(jnp.bfloat16), w_bf16, preferred_element_type=jnp.float32)


def _round_up(n, m):
    return ((n + m - 1) // m) * m


def _pick_tile(n, max_tile):
    # Largest tile <= max_tile, multiple of 8, and (when possible) >= 2 grid
    # steps so the "parallel" axis can shard across v7x's two TensorCores.
    if n <= 16:
        return _round_up(max(n, 8), 8)
    return min(max_tile, _round_up(-(-n // 2), 8))


def _put(slab, row, arr):
    return slab.at[row:row + arr.shape[0], 0:arr.shape[1]].set(arr)


# =============================================================================
# Weight packing: many tiny tensors -> one lane-dense slab per kernel (bf16)
# =============================================================================
def pack_encoder_slab(p):
    s = jnp.zeros((ENC_ROWS, SLAB_W), jnp.float32)
    s = _put(s, ENC_W_LIN, p['w_lin'])
    s = _put(s, ENC_B0_W0, p['b0_w0'])
    s = _put(s, ENC_B0_W1, p['b0_w1'])
    s = _put(s, ENC_B1_W0, p['b1_w0'])
    s = _put(s, ENC_B1_W1, p['b1_w1'])
    s = _put(s, ENC_WK, p['wk'])
    for off, name in enumerate(['b_lin', 'b0_b0', 'b0_b1', 'b1_lnw', 'b1_lnb',
                                'b1_b0', 'b1_b1', 'mix_lnw', 'mix_lnb', 'bk']):
        s = _put(s, ENC_VEC + 2 * off, p[name])
    return s.astype(jnp.bfloat16)


def pack_mixer_slab(p):
    s = jnp.zeros((MIX_ROWS, SLAB_W), jnp.float32)
    s = _put(s, MIX_WT0, p['wt0'])
    s = _put(s, MIX_WT1, p['wt1'])
    s = _put(s, MIX_PW0, p['p_w0'])
    s = _put(s, MIX_PW1, p['p_w1'])
    s = _put(s, MIX_WHEAD, p['w_head'])          # real cols 0:N_CLASSES, rest 0
    for off, name in enumerate(['bt0', 'p_lnw', 'p_lnb', 'p_b0', 'p_b1',
                                'h_lnw', 'h_lnb', 'b_head']):
        s = _put(s, MIX_VEC + 2 * off, p[name])
    return s.astype(jnp.bfloat16)


# =============================================================================
# Kernel 1: encoder  (x = linear + residual blocks ; k = K(LayerNorm(x)))
#   output is a lane-dense (rows, 2*D_MAIN) slab [x | k]
# =============================================================================
def encoder_kernel(feat_ref, w_ref, xk_ref):
    def m(r, nr, nc):
        return w_ref[r:r + nr, 0:nc]                       # bf16 matrix block

    def v(off, nc):
        r = ENC_VEC + 2 * off
        return w_ref[r:r + 1, 0:nc].astype(jnp.float32)    # bias / LN row (f32)

    f = feat_ref[...]
    x = _mxu(f, m(ENC_W_LIN, D_IN, D_MAIN)) + v(0, D_MAIN)

    # encoder block 0 (no prenorm); dropout is identity in eval mode
    h = jnp.maximum(_mxu(x, m(ENC_B0_W0, D_MAIN, D_BLOCK)) + v(1, D_BLOCK), 0.0)
    x = x + _mxu(h, m(ENC_B0_W1, D_BLOCK, D_MAIN)) + v(2, D_MAIN)

    # encoder block 1 (prenorm LayerNorm)
    h = _ln(x, v(3, D_MAIN), v(4, D_MAIN))
    h = jnp.maximum(_mxu(h, m(ENC_B1_W0, D_MAIN, D_BLOCK)) + v(5, D_BLOCK), 0.0)
    x = x + _mxu(h, m(ENC_B1_W1, D_BLOCK, D_MAIN)) + v(6, D_MAIN)

    # mixer normalization then K projection
    kx = _ln(x, v(7, D_MAIN), v(8, D_MAIN))
    kk = _mxu(kx, m(ENC_WK, D_MAIN, D_MAIN)) + v(9, D_MAIN)

    # write both halves directly (no lane-concat temporary)
    xk_ref[:, 0:D_MAIN] = x
    xk_ref[:, D_MAIN:2 * D_MAIN] = kk


def encode_pallas(feat, enc_slab, tile_rows=2048):
    n = feat.shape[0]
    tile = _pick_tile(n, tile_rows)
    n_pad = _round_up(n, tile)
    # TODO(synk): jnp.pad copies the whole feature array; for very large
    #             candidate sets a ragged last tile / second small call avoids it.
    feat_p = feat if n_pad == n else jnp.pad(feat, ((0, n_pad - n), (0, 0)))

    xk = pl.pallas_call(
        encoder_kernel,
        out_shape=jax.ShapeDtypeStruct((n_pad, 2 * D_MAIN), jnp.float32),
        grid=(n_pad // tile,),
        in_specs=[pl.BlockSpec((tile, D_IN), lambda i: (i, 0)),
                  pl.BlockSpec((ENC_ROWS, SLAB_W), lambda i: (0, 0))],
        out_specs=pl.BlockSpec((tile, 2 * D_MAIN), lambda i: (i, 0)),
        compiler_params=pltpu.CompilerParams(dimension_semantics=("parallel",)),
    )(feat_p, enc_slab)
    return xk[:n, :D_MAIN], xk[:n, D_MAIN:]


# =============================================================================
# Kernel 2: retrieval mixer + predictor block + head
#   context tensors arrive pre-flattened (tb*C, D) in bf16; C == 8 == the f32
#   sublane tile, so all group math is done with free (tb*C, D) <-> (tb, C, D)
#   reshapes, sublane broadcasts and sublane-group reductions (no gather
#   matrices, no extra MXU work).
# =============================================================================
def mixer_predictor_kernel(x_ref, k_ref, ck_ref, cye_ref, w_ref, out_ref):
    def m(r, nr, nc):
        return w_ref[r:r + nr, 0:nc]                       # bf16 matrix block

    def v(off, nc):
        r = MIX_VEC + 2 * off
        return w_ref[r:r + 1, 0:nc].astype(jnp.float32)    # bias / LN row (f32)

    x = x_ref[...]                                  # (tb, D)   f32
    kq = k_ref[...]                                 # (tb, D)   f32
    ck = ck_ref[...].astype(jnp.float32)            # (tb*C, D)
    cye = cye_ref[...].astype(jnp.float32)          # (tb*C, D)
    tb, dm = x.shape
    nf = ck.shape[0]
    c = nf // tb

    ck3 = ck.reshape(tb, c, dm)
    diff3 = kq[:, None, :] - ck3                    # (tb, C, D), sublane broadcast

    # similarities = -|k|^2 + 2 k.ck - |ck|^2 == -||k - ck||^2  (exact algebra);
    # softmax over context, done entirely in the sublane-group domain.
    sim3 = -jnp.sum(diff3 * diff3, axis=-1, keepdims=True)          # (tb, C, 1)
    sim3 = sim3 - jnp.max(sim3, axis=1, keepdims=True)
    e3 = jnp.exp(sim3)
    probs3 = e3 * pl.reciprocal(jnp.sum(e3, axis=1, keepdims=True), approx=True)
    # context_dropout is identity in eval mode

    # values = label_emb + T(k - context_k)   (T's second linear has no bias)
    diff = diff3.reshape(nf, dm)
    t = jnp.maximum(_mxu(diff, m(MIX_WT0, D_MAIN, D_BLOCK)) + v(0, D_BLOCK), 0.0)
    t = _mxu(t, m(MIX_WT1, D_BLOCK, D_MAIN))
    values3 = cye.reshape(tb, c, dm) + t.reshape(tb, c, dm)         # (tb, C, D)

    # context_x[b] = sum_c probs[b, c] * values[b, c, :]  (sublane-group reduce)
    x = x + jnp.sum(values3 * probs3, axis=1)

    # predictor block (prenorm); dropouts are identity in eval mode
    h = _ln(x, v(1, D_MAIN), v(2, D_MAIN))
    h = jnp.maximum(_mxu(h, m(MIX_PW0, D_MAIN, D_BLOCK)) + v(3, D_BLOCK), 0.0)
    x = x + _mxu(h, m(MIX_PW1, D_BLOCK, D_MAIN)) + v(4, D_MAIN)

    # head: LayerNorm -> ReLU -> Linear(d_main, n_classes) (lane-padded to 128)
    h = jnp.maximum(_ln(x, v(5, D_MAIN), v(6, D_MAIN)), 0.0)
    out_ref[...] = _mxu(h, m(MIX_WHEAD, D_MAIN, HEAD_W)) + v(7, HEAD_W)


def mixer_predictor_pallas(x, k, ck_flat, cye_flat, mix_slab, context_size,
                           tile_b=256):
    b = x.shape[0]
    c = context_size
    tb = _pick_tile(b, tile_b)
    b_pad = _round_up(b, tb)
    if b_pad != b:
        pad = b_pad - b
        x = jnp.pad(x, ((0, pad), (0, 0)))
        k = jnp.pad(k, ((0, pad), (0, 0)))
        ck_flat = jnp.pad(ck_flat, ((0, pad * c), (0, 0)))
        cye_flat = jnp.pad(cye_flat, ((0, pad * c), (0, 0)))

    out = pl.pallas_call(
        mixer_predictor_kernel,
        out_shape=jax.ShapeDtypeStruct((b_pad, HEAD_W), jnp.float32),
        grid=(b_pad // tb,),
        in_specs=[pl.BlockSpec((tb, D_MAIN), lambda i: (i, 0)),
                  pl.BlockSpec((tb, D_MAIN), lambda i: (i, 0)),
                  pl.BlockSpec((tb * c, D_MAIN), lambda i: (i, 0)),
                  pl.BlockSpec((tb * c, D_MAIN), lambda i: (i, 0)),
                  pl.BlockSpec((MIX_ROWS, SLAB_W), lambda i: (0, 0))],
        out_specs=pl.BlockSpec((tb, HEAD_W), lambda i: (i, 0)),
        compiler_params=pltpu.CompilerParams(dimension_semantics=("parallel",)),
    )(x, k, ck_flat, cye_flat, mix_slab)
    return out[:b, :N_CLASSES]


# =============================================================================
# Glue: nearest-neighbour search (faiss IndexFlatL2 equivalent) + gathers
# =============================================================================
def nearest_context(k, cand_k, context_size):
    # TODO(synk): faiss.IndexFlatL2 search replaced with exact L2 top-k in plain JAX.
    d2 = (jnp.sum(k * k, axis=1, keepdims=True)
          - 2.0 * (k @ cand_k.T)
          + jnp.sum(cand_k * cand_k, axis=1)[None, :])
    sim, idx = jax.lax.top_k(-d2, context_size)
    return sim, idx


def tabr_forward(p, x_num, x_cat, cand_x_num, cand_x_cat, cand_y, context_size):
    enc_slab = pack_encoder_slab(p)     # bf16
    mix_slab = pack_mixer_slab(p)       # bf16

    feat_q = jnp.concatenate([x_num, x_cat], axis=1)
    feat_c = jnp.concatenate([cand_x_num, cand_x_cat], axis=1)
    nq = feat_q.shape[0]

    # single fused encoder call over query + candidate rows
    feats = jnp.concatenate([feat_q, feat_c], axis=0)
    x_all, k_all = encode_pallas(feats, enc_slab)
    x, k = x_all[:nq], k_all[:nq]
    cand_k = k_all[nq:]

    _, ctx_idx = nearest_context(k, cand_k, context_size)            # (B, C)
    # TODO(synk): context gathers stay in XLA (bf16 to halve HBM bytes); an
    #             in-kernel PrefetchScalarGridSpec gather would avoid
    #             materializing the (B*C, D) tensors in HBM entirely.
    idx_flat = ctx_idx.reshape(-1)
    ck_flat = cand_k[idx_flat].astype(jnp.bfloat16)                  # (B*C, D)
    cye_flat = p['emb_table'][cand_y[idx_flat]].astype(jnp.bfloat16)  # (B*C, D)

    logits = mixer_predictor_pallas(x, k, ck_flat, cye_flat, mix_slab,
                                    context_size)
    return logits, (x, k, cand_k, ctx_idx)


# =============================================================================
# Pure-JAX reference (same math, f32, no Pallas) for validation
# =============================================================================
def encode_ref(feat, p):
    x = _mm(feat, p['w_lin']) + p['b_lin']
    h = jnp.maximum(_mm(x, p['b0_w0']) + p['b0_b0'], 0.0)
    x = x + _mm(h, p['b0_w1']) + p['b0_b1']
    h = _ln(x, p['b1_lnw'], p['b1_lnb'])
    h = jnp.maximum(_mm(h, p['b1_w0']) + p['b1_b0'], 0.0)
    x = x + _mm(h, p['b1_w1']) + p['b1_b1']
    k = _mm(_ln(x, p['mix_lnw'], p['mix_lnb']), p['wk']) + p['bk']
    return x, k


def mixer_ref(x, k, ck, cye, p):
    sim = (-jnp.sum(k * k, axis=-1, keepdims=True)
           + 2.0 * jnp.einsum('bd,bcd->bc', k, ck)
           - jnp.sum(ck * ck, axis=-1))
    probs = jax.nn.softmax(sim, axis=-1)
    diff = k[:, None, :] - ck
    t = jnp.maximum(jnp.einsum('bcd,de->bce', diff, p['wt0']) + p['bt0'], 0.0)
    t = jnp.einsum('bce,ed->bcd', t, p['wt1'])
    values = cye + t
    x = x + jnp.einsum('bc,bcd->bd', probs, values)
    h = _ln(x, p['p_lnw'], p['p_lnb'])
    h = jnp.maximum(_mm(h, p['p_w0']) + p['p_b0'], 0.0)
    x = x + _mm(h, p['p_w1']) + p['p_b1']
    h = jnp.maximum(_ln(x, p['h_lnw'], p['h_lnb']), 0.0)
    return _mm(h, p['w_head']) + p['b_head']


# =============================================================================
# Deterministic parameter init (synthetic weights; shapes match the module)
# =============================================================================
def init_params(key):
    ks = jax.random.split(key, 16)

    def lin(k, din, dout):
        bound = 1.0 / math.sqrt(din)
        kw, kb = jax.random.split(k)
        w = jax.random.uniform(kw, (din, dout), jnp.float32, -bound, bound)  # stored transposed
        bias = jax.random.uniform(kb, (1, dout), jnp.float32, -bound, bound)
        return w, bias

    def ln_params(k):
        kw, kb = jax.random.split(k)
        w = 1.0 + 0.1 * jax.random.uniform(kw, (1, D_MAIN), jnp.float32, -1.0, 1.0)
        bias = 0.1 * jax.random.uniform(kb, (1, D_MAIN), jnp.float32, -1.0, 1.0)
        return w, bias

    p = {}
    p['w_lin'], p['b_lin'] = lin(ks[0], D_IN, D_MAIN)
    p['b0_w0'], p['b0_b0'] = lin(ks[1], D_MAIN, D_BLOCK)
    p['b0_w1'], p['b0_b1'] = lin(ks[2], D_BLOCK, D_MAIN)
    p['b1_lnw'], p['b1_lnb'] = ln_params(ks[3])
    p['b1_w0'], p['b1_b0'] = lin(ks[4], D_MAIN, D_BLOCK)
    p['b1_w1'], p['b1_b1'] = lin(ks[5], D_BLOCK, D_MAIN)
    p['mix_lnw'], p['mix_lnb'] = ln_params(ks[6])
    p['wk'], p['bk'] = lin(ks[7], D_MAIN, D_MAIN)
    # label encoder: nn.Embedding(n_classes, d_main), uniform(-1, 1)
    p['emb_table'] = jax.random.uniform(ks[8], (N_CLASSES, D_MAIN), jnp.float32, -1.0, 1.0)
    # T: Linear(d_main, d_block) -> ReLU -> Linear(d_block, d_main, bias=False)
    p['wt0'], p['bt0'] = lin(ks[9], D_MAIN, D_BLOCK)
    p['wt1'], _ = lin(ks[10], D_BLOCK, D_MAIN)
    # predictor block (prenorm)
    p['p_lnw'], p['p_lnb'] = ln_params(ks[11])
    p['p_w0'], p['p_b0'] = lin(ks[12], D_MAIN, D_BLOCK)
    p['p_w1'], p['p_b1'] = lin(ks[13], D_BLOCK, D_MAIN)
    # head
    p['h_lnw'], p['h_lnb'] = ln_params(ks[14])
    p['w_head'], p['b_head'] = lin(ks[15], D_MAIN, N_CLASSES)
    return p


# =============================================================================
if __name__ == "__main__":
    key = jax.random.PRNGKey(0)
    kp, kd = jax.random.split(key)
    params = init_params(kp)

    B, N_CAND = 8, 32
    k1, k2, k3, k4, k5 = jax.random.split(kd, 5)
    x_num = jax.random.normal(k1, (B, N_NUM), jnp.float32)
    x_cat = jax.random.normal(k2, (B, N_CAT), jnp.float32)        # pre-encoded cat features
    cand_x_num = jax.random.normal(k3, (N_CAND, N_NUM), jnp.float32)
    cand_x_cat = jax.random.normal(k4, (N_CAND, N_CAT), jnp.float32)
    cand_y = jax.random.randint(k5, (N_CAND,), 0, N_CLASSES)

    logits, (x_p, k_p, cand_k_p, ctx_idx) = tabr_forward(
        params, x_num, x_cat, cand_x_num, cand_x_cat, cand_y, CONTEXT_SIZE)
    logits = jax.block_until_ready(logits)
    assert logits.shape == (B, N_CLASSES)

    # ---- validate kernels against a pure-JAX f32 reference ----
    # (tolerances account for bf16 MXU operands inside the Pallas kernels)
    feat_q = jnp.concatenate([x_num, x_cat], axis=1)
    feat_c = jnp.concatenate([cand_x_num, cand_x_cat], axis=1)
    x_r, k_r = encode_ref(feat_q, params)
    _, cand_k_r = encode_ref(feat_c, params)
    np.testing.assert_allclose(np.asarray(x_p), np.asarray(x_r), rtol=2e-2, atol=2e-2)
    np.testing.assert_allclose(np.asarray(k_p), np.asarray(k_r), rtol=2e-2, atol=2e-2)
    np.testing.assert_allclose(np.asarray(cand_k_p), np.asarray(cand_k_r), rtol=2e-2, atol=2e-2)

    context_k = cand_k_p[ctx_idx]                               # (B, C, D)
    context_y_emb = params['emb_table'][cand_y[ctx_idx]]        # (B, C, D)
    logits_ref = mixer_ref(x_p, k_p, context_k, context_y_emb, params)
    np.testing.assert_allclose(np.asarray(logits), np.asarray(logits_ref), rtol=2e-2, atol=2e-2)

    print("KERNEL_OK")
</pallas_src>

<mosaic_0001>
module attributes {stable_mosaic.version = 11 : i64} {
  func.func @encoder_kernel(%arg0: i32, %arg1: memref<24x12xf32, #tpu.memory_space<vmem>>, %arg2: memref<272x128xbf16, #tpu.memory_space<vmem>>, %arg3: memref<24x64xf32, #tpu.memory_space<vmem>>) attributes {dimension_semantics = [#tpu.dimension_semantics<parallel>], iteration_bounds = array<i64: 2>, scalar_prefetch = 0 : i64, scratch_operands = 0 : i64, tpu.core_type = #tpu.core_type<tc>, window_params = [{transform_indices = @transform_0, window_bounds = array<i64: 24, 12>}, {pipeline_mode = #tpu.pipeline_mode<synchronous>, transform_indices = @transform_1, window_bounds = array<i64: 272, 128>}, {transform_indices = @transform_2, window_bounds = array<i64: 24, 64>}]} {
    %c0 = arith.constant 0 : index
    %c0_0 = arith.constant 0 : index
    %0 = vector.load %arg1[%c0, %c0_0] : memref<24x12xf32, #tpu.memory_space<vmem>>, vector<24x12xf32>
    %c0_1 = arith.constant 0 : index
    %c0_2 = arith.constant 0 : index
    %1 = vector.load %arg2[%c0_1, %c0_2] : memref<272x128xbf16, #tpu.memory_space<vmem>>, vector<12x32xbf16>
    %2 = arith.truncf %0 : vector<24x12xf32> to vector<24x12xbf16>
    %cst = arith.constant dense<0.000000e+00> : vector<24x32xf32>
    %3 = tpu.matmul %2, %1, %cst {dimension_numbers = #tpu.dot_dimension_numbers<[1], [0], [0], [1], [0, 0, 1, 1], [], []>} : vector<24x12xbf16>, vector<12x32xbf16>, vector<24x32xf32> -> vector<24x32xf32>
    %c240 = arith.constant 240 : index
    %c0_3 = arith.constant 0 : index
    %4 = vector.load %arg2[%c240, %c0_3] : memref<272x128xbf16, #tpu.memory_space<vmem>>, vector<1x32xbf16>
    %5 = arith.extf %4 : vector<1x32xbf16> to vector<1x32xf32>
    %6 = vector.broadcast %5 : vector<1x32xf32> to vector<24x32xf32>
    %7 = arith.addf %3, %6 : vector<24x32xf32>
    %c16 = arith.constant 16 : index
    %c0_4 = arith.constant 0 : index
    %8 = vector.load %arg2[%c16, %c0_4] : memref<272x128xbf16, #tpu.memory_space<vmem>>, vector<32x64xbf16>
    %9 = arith.truncf %7 : vector<24x32xf32> to vector<24x32xbf16>
    %cst_5 = arith.constant dense<0.000000e+00> : vector<24x64xf32>
    %10 = tpu.matmul %9, %8, %cst_5 {dimension_numbers = #tpu.dot_dimension_numbers<[1], [0], [0], [1], [0, 0, 1, 1], [], []>} : vector<24x32xbf16>, vector<32x64xbf16>, vector<24x64xf32> -> vector<24x64xf32>
    %c242 = arith.constant 242 : index
    %c0_6 = arith.constant 0 : index
    %11 = vector.load %arg2[%c242, %c0_6] : memref<272x128xbf16, #tpu.memory_space<vmem>>, vector<1x64xbf16>
    %12 = arith.extf %11 : vector<1x64xbf16> to vector<1x64xf32>
    %13 = vector.broadcast %12 : vector<1x64xf32> to vector<24x64xf32>
    %14 = arith.addf %10, %13 : vector<24x64xf32>
    %cst_7 = arith.constant 0.000000e+00 : f32
    %15 = vector.broadcast %cst_7 : f32 to vector<24x64xf32>
    %16 = arith.maximumf %14, %15 : vector<24x64xf32>
    %c48 = arith.constant 48 : index
    %c0_8 = arith.constant 0 : index
    %17 = vector.load %arg2[%c48, %c0_8] : memref<272x128xbf16, #tpu.memory_space<vmem>>, vector<64x32xbf16>
    %18 = arith.truncf %16 : vector<24x64xf32> to vector<24x64xbf16>
    %cst_9 = arith.constant dense<0.000000e+00> : vector<24x32xf32>
    %19 = tpu.matmul %18, %17, %cst_9 {dimension_numbers = #tpu.dot_dimension_numbers<[1], [0], [0], [1], [0, 0, 1, 1], [], []>} : vector<24x64xbf16>, vector<64x32xbf16>, vector<24x32xf32> -> vector<24x32xf32>
    %20 = arith.addf %7, %19 : vector<24x32xf32>
    %c244 = arith.constant 244 : index
    %c0_10 = arith.constant 0 : index
    %21 = vector.load %arg2[%c244, %c0_10] : memref<272x128xbf16, #tpu.memory_space<vmem>>, vector<1x32xbf16>
    %22 = arith.extf %21 : vector<1x32xbf16> to vector<1x32xf32>
    %23 = vector.broadcast %22 : vector<1x32xf32> to vector<24x32xf32>
    %24 = arith.addf %20, %23 : vector<24x32xf32>
    %c246 = arith.constant 246 : index
    %c0_11 = arith.constant 0 : index
    %25 = vector.load %arg2[%c246, %c0_11] : memref<272x128xbf16, #tpu.memory_space<vmem>>, vector<1x32xbf16>
    %26 = arith.extf %25 : vector<1x32xbf16> to vector<1x32xf32>
    %c248 = arith.constant 248 : index
    %c0_12 = arith.constant 0 : index
    %27 = vector.load %arg2[%c248, %c0_12] : memref<272x128xbf16, #tpu.memory_space<vmem>>, vector<1x32xbf16>
    %28 = arith.extf %27 : vector<1x32xbf16> to vector<1x32xf32>
    %cst_13 = arith.constant dense<0.000000e+00> : vector<24xf32>
    %29 = vector.multi_reduction <add>, %24, %cst_13 [1] : vector<24x32xf32> to vector<24xf32>
    %30 = vector.shape_cast %29 : vector<24xf32> to vector<24x1xf32>
    %cst_14 = arith.constant 3.200000e+01 : f32
    %31 = vector.broadcast %cst_14 : f32 to vector<24x1xf32>
    %32 = arith.divf %30, %31 : vector<24x1xf32>
    %33 = vector.broadcast %32 : vector<24x1xf32> to vector<24x32xf32>
    %34 = arith.subf %24, %33 : vector<24x32xf32>
    %35 = arith.mulf %34, %34 : vector<24x32xf32>
    %cst_15 = arith.constant dense<0.000000e+00> : vector<24xf32>
    %36 = vector.multi_reduction <add>, %35, %cst_15 [1] : vector<24x32xf32> to vector<24xf32>
    %37 = vector.shape_cast %36 : vector<24xf32> to vector<24x1xf32>
    %cst_16 = arith.constant 3.200000e+01 : f32
    %38 = vector.broadcast %cst_16 : f32 to vector<24x1xf32>
    %39 = arith.divf %37, %38 : vector<24x1xf32>
    %40 = vector.broadcast %32 : vector<24x1xf32> to vector<24x32xf32>
    %41 = arith.subf %24, %40 : vector<24x32xf32>
    %cst_17 = arith.constant 9.99999974E-6 : f32
    %42 = vector.broadcast %cst_17 : f32 to vector<24x1xf32>
    %43 = arith.addf %39, %42 : vector<24x1xf32>
    %44 = math.rsqrt %43 : vector<24x1xf32>
    %45 = vector.broadcast %44 : vector<24x1xf32> to vector<24x32xf32>
    %46 = arith.mulf %41, %45 : vector<24x32xf32>
    %47 = vector.broadcast %26 : vector<1x32xf32> to vector<24x32xf32>
    %48 = arith.mulf %46, %47 : vector<24x32xf32>
    %49 = vector.broadcast %28 : vector<1x32xf32> to vector<24x32xf32>
    %50 = arith.addf %48, %49 : vector<24x32xf32>
    %c112 = arith.constant 112 : index
    %c0_18 = arith.constant 0 : index
    %51 = vector.load %arg2[%c112, %c0_18] : memref<272x128xbf16, #tpu.memory_space<vmem>>, vector<32x64xbf16>
    %52 = arith.truncf %50 : vector<24x32xf32> to vector<24x32xbf16>
    %cst_19 = arith.constant dense<0.000000e+00> : vector<24x64xf32>
    %53 = tpu.matmul %52, %51, %cst_19 {dimension_numbers = #tpu.dot_dimension_numbers<[1], [0], [0], [1], [0, 0, 1, 1], [], []>} : vector<24x32xbf16>, vector<32x64xbf16>, vector<24x64xf32> -> vector<24x64xf32>
    %c250 = arith.constant 250 : index
    %c0_20 = arith.constant 0 : index
    %54 = vector.load %arg2[%c250, %c0_20] : memref<272x128xbf16, #tpu.memory_space<vmem>>, vector<1x64xbf16>
    %55 = arith.extf %54 : vector<1x64xbf16> to vector<1x64xf32>
    %56 = vector.broadcast %55 : vector<1x64xf32> to vector<24x64xf32>
    %57 = arith.addf %53, %56 : vector<24x64xf32>
    %cst_21 = arith.constant 0.000000e+00 : f32
    %58 = vector.broadcast %cst_21 : f32 to vector<24x64xf32>
    %59 = arith.maximumf %57, %58 : vector<24x64xf32>
    %c144 = arith.constant 144 : index
    %c0_22 = arith.constant 0 : index
    %60 = vector.load %arg2[%c144, %c0_22] : memref<272x128xbf16, #tpu.memory_space<vmem>>, vector<64x32xbf16>
    %61 = arith.truncf %59 : vector<24x64xf32> to vector<24x64xbf16>
    %cst_23 = arith.constant dense<0.000000e+00> : vector<24x32xf32>
    %62 = tpu.matmul %61, %60, %cst_23 {dimension_numbers = #tpu.dot_dimension_numbers<[1], [0], [0], [1], [0, 0, 1, 1], [], []>} : vector<24x64xbf16>, vector<64x32xbf16>, vector<24x32xf32> -> vector<24x32xf32>
    %63 = arith.addf %24, %62 : vector<24x32xf32>
    %c252 = arith.constant 252 : index
    %c0_24 = arith.constant 0 : index
    %64 = vector.load %arg2[%c252, %c0_24] : memref<272x128xbf16, #tpu.memory_space<vmem>>, vector<1x32xbf16>
    %65 = arith.extf %64 : vector<1x32xbf16> to vector<1x32xf32>
    %66 = vector.broadcast %65 : vector<1x32xf32> to vector<24x32xf32>
    %67 = arith.addf %63, %66 : vector<24x32xf32>
    %c254 = arith.constant 254 : index
    %c0_25 = arith.constant 0 : index
    %68 = vector.load %arg2[%c254, %c0_25] : memref<272x128xbf16, #tpu.memory_space<vmem>>, vector<1x32xbf16>
    %69 = arith.extf %68 : vector<1x32xbf16> to vector<1x32xf32>
    %c256 = arith.constant 256 : index
    %c0_26 = arith.constant 0 : index
    %70 = vector.load %arg2[%c256, %c0_26] : memref<272x128xbf16, #tpu.memory_space<vmem>>, vector<1x32xbf16>
    %71 = arith.extf %70 : vector<1x32xbf16> to vector<1x32xf32>
    %cst_27 = arith.constant dense<0.000000e+00> : vector<24xf32>
    %72 = vector.multi_reduction <add>, %67, %cst_27 [1] : vector<24x32xf32> to vector<24xf32>
    %73 = vector.shape_cast %72 : vector<24xf32> to vector<24x1xf32>
    %cst_28 = arith.constant 3.200000e+01 : f32
    %74 = vector.broadcast %cst_28 : f32 to vector<24x1xf32>
    %75 = arith.divf %73, %74 : vector<24x1xf32>
    %76 = vector.broadcast %75 : vector<24x1xf32> to vector<24x32xf32>
    %77 = arith.subf %67, %76 : vector<24x32xf32>
    %78 = arith.mulf %77, %77 : vector<24x32xf32>
    %cst_29 = arith.constant dense<0.000000e+00> : vector<24xf32>
    %79 = vector.multi_reduction <add>, %78, %cst_29 [1] : vector<24x32xf32> to vector<24xf32>
    %80 = vector.shape_cast %79 : vector<24xf32> to vector<24x1xf32>
    %cst_30 = arith.constant 3.200000e+01 : f32
    %81 = vector.broadcast %cst_30 : f32 to vector<24x1xf32>
    %82 = arith.divf %80, %81 : vector<24x1xf32>
    %83 = vector.broadcast %75 : vector<24x1xf32> to vector<24x32xf32>
    %84 = arith.subf %67, %83 : vector<24x32xf32>
    %cst_31 = arith.constant 9.99999974E-6 : f32
    %85 = vector.broadcast %cst_31 : f32 to vector<24x1xf32>
    %86 = arith.addf %82, %85 : vector<24x1xf32>
    %87 = math.rsqrt %86 : vector<24x1xf32>
    %88 = vector.broadcast %87 : vector<24x1xf32> to vector<24x32xf32>
    %89 = arith.mulf %84, %88 : vector<24x32xf32>
    %90 = vector.broadcast %69 : vector<1x32xf32> to vector<24x32xf32>
    %91 = arith.mulf %89, %90 : vector<24x32xf32>
    %92 = vector.broadcast %71 : vector<1x32xf32> to vector<24x32xf32>
    %93 = arith.addf %91, %92 : vector<24x32xf32>
    %c208 = arith.constant 208 : index
    %c0_32 = arith.constant 0 : index
    %94 = vector.load %arg2[%c208, %c0_32] : memref<272x128xbf16, #tpu.memory_space<vmem>>, vector<32x32xbf16>
    %95 = arith.truncf %93 : vector<24x32xf32> to vector<24x32xbf16>
    %cst_33 = arith.constant dense<0.000000e+00> : vector<24x32xf32>
    %96 = tpu.matmul %95, %94, %cst_33 {dimension_numbers = #tpu.dot_dimension_numbers<[1], [0], [0], [1], [0, 0, 1, 1], [], []>} : vector<24x32xbf16>, vector<32x32xbf16>, vector<24x32xf32> -> vector<24x32xf32>
    %c258 = arith.constant 258 : index
    %c0_34 = arith.constant 0 : index
    %97 = vector.load %arg2[%c258, %c0_34] : memref<272x128xbf16, #tpu.memory_space<vmem>>, vector<1x32xbf16>
    %98 = arith.extf %97 : vector<1x32xbf16> to vector<1x32xf32>
    %99 = vector.broadcast %98 : vector<1x32xf32> to vector<24x32xf32>
    %100 = arith.addf %96, %99 : vector<24x32xf32>
    %c0_35 = arith.constant 0 : index
    %c0_36 = arith.constant 0 : index
    %101 = vector.load %arg3[%c0_35, %c0_36] : memref<24x64xf32, #tpu.memory_space<vmem>>, vector<24x32xf32>
    tpu.vector_store %arg3[%c0_35, %c0_36], %67 {strides = array<i32>} : memref<24x64xf32, #tpu.memory_space<vmem>>, vector<24x32xf32>,
    %c0_37 = arith.constant 0 : index
    %c32 = arith.constant 32 : index
    %102 = vector.load %arg3[%c0_37, %c32] : memref<24x64xf32, #tpu.memory_space<vmem>>, vector<24x32xf32>
    tpu.vector_store %arg3[%c0_37, %c32], %100 {strides = array<i32>} : memref<24x64xf32, #tpu.memory_space<vmem>>, vector<24x32xf32>,
    return
  }
  func.func @transform_0(%arg0: i32) -> (i32, i32) {
    %c0_i32 = arith.constant 0 : i32
    %c0_i32_0 = arith.constant 0 : i32
    return %arg0, %c0_i32 : i32, i32
  }
  func.func @transform_1(%arg0: i32) -> (i32, i32) {
    %c0_i32 = arith.constant 0 : i32
    %c0_i32_0 = arith.constant 0 : i32
    %c0_i32_1 = arith.constant 0 : i32
    return %c0_i32, %c0_i32_0 : i32, i32
  }
  func.func @transform_2(%arg0: i32) -> (i32, i32) {
    %c0_i32 = arith.constant 0 : i32
    %c0_i32_0 = arith.constant 0 : i32
    return %arg0, %c0_i32 : i32, i32
  }
}

</mosaic_0001>

<bundles_post_ra>
// kernel: tpu_custom_call.1
= control target key start
LH: loop header
LB: loop body
LE: loop exit
PB: predicated region body
PF: predicated region fallthrough
CT: control target
= control target key end

     0   :  { %7 = vsyncpa [#allocation3], 0  ;;  %s1437_s0 = inlined_call_operand.vmem [shape: f32[48,12], index: 0, kind: input, shape index: {}]   ;;  %s1438_s1 = inlined_call_operand.hbm [shape: bf16[272,128], index: 1, kind: input, shape index: {}]   ;;  %s1439_s2 = inlined_call_operand.hbm [shape: f32[48,64], index: 2, kind: output, shape index: {}]  }
   0x1   :  { %8 = vsyncpa [#allocation4], 0 }
   0x2   :  { %10 = vsyncpa [#allocation4 + $0x1], 0  ;;  %s1223_s9 = smov 0   ;;  %s1225_s10 = smov 0  }
   0x3   :  { %s1227_s11 = smov 0   ;;  %s1229_s12 = smov 0  }
   0x4 LB: > { %s1244_s13 = sadd.s32 4294967295, %s1199_s12   ;;  %s902_s14 = sadd.s32 4294967294, %s1199_s12   ;;  %s1199_s12 = sphi %s1229_s12, %s1455_s12   ;;  %s1195_s11 = sphi %s1227_s11, %s1454_s11   ;;  %s1191_s10 = sphi %s1225_s10, %s1453_s10   ;;  %s1187_s9 = sphi %s1223_s9, %s1452_s9  }
   0x5   : > { %s1248_s15 = sadd.s32 1, %s1199_s12   ;;  %s70_s16 = sadd.s32 1, %s1195_s11 }
   0x6   : > { %s67_s17 = ssub.s32 %s1199_s12, %s1248_s15  ;;  %p80_p0 = scmp.ne.s32.totalorder %s1195_s11, %s1191_s10 }
   0x7   : > { %p68_p1 = scmp.eq.s32.totalorder %s67_s17, 0  ;;  %p81_p2 = scmp.eq.s32.totalorder %s1244_s13, 1 }
   0x8   : > { %p86_p3 = scmp.ne.s32.totalorder %s1191_s10, %s1187_s9  ;;  %p87_p4 = scmp.eq.s32.totalorder %s902_s14, 1 }
   0x9   : > { %s1259_s18 = scalar_select %p68_p1, %s1195_s11, %s70_s16  }
   0xa   : > { %p1261_p5 = por %p81_p2, %p80_p0  ;;  %p1265_p6 = por %p87_p4, %p86_p3 }
   0xb   : > { %p903_p7 = scmp.ge.s32.totalorder %s1199_s12, 1  ;;  %p94_p8 = scmp.lt.s32.totalorder %s1199_s12, 3 }
   0xc   : > { %s1443_s19 = scalar_select %p1261_p5, 1, 0 }
   0xd   : > { %s1444_s20 = scalar_select %p1265_p6, 1, 0 }
   0xe   : > { %p1440_p9 = scmp.eq.s32.totalorder %s1244_s13, 0  ;;  %p1272_p10 = pnand %p903_p7, %p94_p8 }
   0xf   : > { %s1201_s22 = smov [#allocation2]   ;;  %s1105_s27 = scalar_lea.hbm %s1438_s1, 2176 }
  0x10   : > { %s1445_s21 = scalar_select %p1272_p10, 1, 0 }
  0x11   : > { %s106_s23 = sshll.u32 %s1201_s22, 4  ;;  %p1029_p11 = pneg %p1272_p10  ;;  %s107_s23 = int_to_ptr.vmem [resolvable:$true] %s106_s23 }
  0x12   : > { %p1106_p13 = scmp.ne.s32.totalorder %s1438_s1, %s1105_s27  ;;  %p1112_p3 = scmp.lt.u32.totalorder %s1105_s27, %s1438_s1 }
  0x13   : > { %p1280_p12 = pnand %p1440_p9, %p1029_p11 }
  0x15   : > { %p1107_p0 = pneg %p1280_p12 }
  0x17   : > { %p1108_p1 = pnand %p1107_p0, %p1106_p13 }
  0x19   : > { %p1109_p2 = pneg %p1108_p1 }
  0x1b   : > { %p1114_p4 = pnand %p1112_p3, %p1109_p2 }
  0x1d   : > { %1117 = shalt.err (!%p1114_p4)
}
  0x1e   : > { %s1118_s4 = scalar_lea.vmem %s107_s23, 2176  ;;  %p1126_p9 = scmp.lt.s32.totalorder %s107_s23, %s107_s23 }
  0x1f   : > { %p1119_p7 = scmp.ne.s32.totalorder %s107_s23, %s1118_s4  ;;  %p1127_p6 = scmp.lt.s32.totalorder %s1118_s4, %s1118_s4 }
  0x21   : > { %p1121_p8 = pnand %p1119_p7, %p1107_p0  ;;  %p1128_p5 = por %p1127_p6, %p1126_p9 }
  0x23   : > { %p1122_p11 = pneg %p1121_p8 }
  0x25   : > { %p1129_p10 = pnand %p1128_p5, %p1122_p11 }
  0x27   : > { %1132 = shalt.err (!%p1129_p10)
}
  0x28   : > { %s1202_s5 = smov 64   ;;  %s1203_s6 = smov 4  }
  0x29   : > { %1032 = dma.hbm_to_vmem [thread:$0]  (!%p1280_p12), %s1438_s1, 2176, %s107_s23, [#allocation3], %s1202_s5, %s1202_s5, %s1203_s6  }
  0x2a   : > { %p1447_p13 = scmp.ne.s32.totalorder %s1445_s21, 0 }
  0x2b   : > { %p1448_p1 = scmp.eq.s32.totalorder (!%p1447_p13), %s1244_s13, 0 }
  0x2c   : > { %131 = sbr.rel (%p1447_p13) target bundleno = 2152 (0x868), region = 28 }
  0x33   : > { %1178 = dma.done.wait (%p1448_p1), [#allocation3], 2176   ;;  %p1449_p0 = pmov %p1448_p1 }
  0x34   : > { %s153_s14 = smul.u32 3, %s1244_s13  ;;  %vm186_vm0 = vcmask 1045504   ;;  %v1078_v0 = vld [vmem:[#allocation2] sm:$0x3f]   ;;  %vm179_vm1 = vcmask 97280   ;;  %v1079_v7 = vld [vmem:[#allocation2 + $0x8] sm:$0xff]   ;;  %v170_v11 = vlaneseq }
  0x35   : > { %1180 = vsyncadd (%p1449_p0), [#allocation3], 4294965120  ;;  %1021 = vmatprep.subr.msk.bf16.mxu0 %vm186_vm0, %v1078_v0  ;;  %v188_v4 = vsel %vm186_vm0, %v1078_v0, 0  ;;  %973 = vmatprep.subr.bf16.mxu1 %v1079_v7  ;;  %v1080_v8 = vld [vmem:[#allocation2 + $0x10] sm:$0xff]   ;;  %v1081_v9 = vld [vmem:[#allocation2 + $0x18] sm:$0xff]   ;;  %vm262_vm2 = vcmask 261120  }
  0x36   : > { %p154_p5 = scmp.lt.s32.totalorder %s153_s14, 5  ;;  %968 = vmatpush3.bf16.msra.mxu0 %v188_v4  ;;  %974 = vmatpush3.bf16.msra.mxu1 %v1079_v7  ;;  %v1082_v10 = vld [vmem:[#allocation2 + $0x20] sm:$0xff]   ;;  %v1310_v12 = vshrl.u32 %v170_v11, 7  ;;  %v168_v13 = vld [vmem:[#allocation2 + $0x78] sm:$0x1]  ;;  %v1083_v26 = vld [vmem:[#allocation2 + $0x28] sm:$0xff]  }
  0x37   : > { %975 = vmatprep.subr.bf16.mxu1 %v1080_v8  ;;  %981 = vmatprep.subr.bf16.mxu0 %v1081_v9  ;;  %v169_v14 = vunpack.c.l.bf16 %v168_v13  ;;  %v1084_v27 = vld [vmem:[#allocation2 + $0x30] sm:$0xff]   ;;  %v244_v28 = vld [vmem:[#allocation2 + $0x78] sm:$0x2]  ;;  %vm354_vm3 = vcmask 523264   ;;  %v412_v44 = vld [vmem:[#allocation2 + $0x78] sm:$0x4] }
  0x38   : > { %s1457_s14 = smov (!%p154_p5, %s153_s14), 5  ;;  %v1313_v15 = vsub.s32 0, %v1310_v12  ;;  %v245_v29 = vunpack.c.l.bf16 %v244_v28  ;;  %v1319_v30 = vsub.s32 2, %v1310_v12  ;;  %v413_v45 = vunpack.c.l.bf16 %v412_v44  ;;  %v1085_v13 = vld [vmem:[#allocation2 + $0x38] sm:$0xff]   ;;  %s150_s21 = sand.u32 1, %s1191_s10  }
  0x39   : > { %s908_s16 = sshll.u32 %s1457_s14, 3  ;;  %v416_v46 = vsub.s32 4, %v1310_v12  ;;  %v467_v28 = vsub.s32 6, %v1310_v12  ;;  %s1022_s24 = smul.u32 24, %s150_s21  ;;  %v723_v12 = vld [vmem:[#allocation2 + $0x80] sm:$0x2] }
  0x3a   : > { %s157_s23 = scalar_lea.vmem %s1437_s0, %s908_s16  ;;  %976 = vmatpush3.bf16.msra.mxu1 %v1080_v8  ;;  %v173_v16 = vrot.slane %v169_v14, %v1313_v15  ;;  %v249_v31 = vrot.slane %v245_v29, %v1319_v30  ;;  %v1086_v14 = vld [vmem:[#allocation2 + $0x40] sm:$0xff]   ;;  %v423_v29 = vld [vmem:[#allocation2 + $0x7c] sm:$0x1]  ;;  %s1204_s26 = smov 32   ;;  %vm810_vm4 = vcmask 523520  }
  0x3b   : > { %v161_v1 = vld [vmem:[%s157_s23] sm:$0xff]  ;;  %v162_v2 = vld [vmem:[%s157_s23 + $0x8] sm:$0xff]  ;;  %v163_v3 = vld [vmem:[%s157_s23 + $0x10] sm:$0xff]  ;;  %v417_v47 = vrot.slane %v413_v45, %v416_v46  ;;  %993 = vmatprep.subr.bf16.mxu1 %v1085_v13  ;;  %s1362_s25 = scalar_lea.vmem [#allocation5], %s1022_s24  ;;  %s939_s27 = smul.u32 384, %s1244_s13 }
  0x3c   : > { %v166_v5 = vpack.c.bf16 %v162_v2, %v161_v1  ;;  %v167_v6 = vpack.c.bf16 %v163_v3, %v163_v3  ;;  %s828_s28 = sshll.u32 %s1362_s25, 4  ;;  %s1396_s4 = scalar_lea.sflag [#allocation4], %s150_s21  ;;  %s1391_s28 = int_to_ptr.vmem [resolvable:$true] %s828_s28 }
  0x3d   : > { %s1389_s3 = scalar_lea.hbm %s1439_s2, %s939_s27  ;;  %s1133_s13 = scalar_lea.vmem %s1391_s28, 384 }
  0x3e   : > { %969 = vmatprep.mubr.msk.bf16.mxu0 %vm179_vm1, %v166_v5  ;;  %p1134_p6 = scmp.ne.s32.totalorder %s1391_s28, %s1133_s13  ;;  %p1450_p9 = scmp.ne.s32.totalorder %s1443_s19, 0 }
  0x3f   : > { %970 = vmatmul.mubr.msk.bf16.vlgmr.msra.gmra.mrb[0].mxu0 %vm179_vm1, %v167_v6  ;;  %s1205_s5 = smov [#allocation5]  }
  0x40   : > { %982 = vmatpush3.bf16.msra.mxu0 %v1081_v9  ;;  %p1135_p10 = pnand %p1134_p6, %p1450_p9  ;;  %s1137_s6 = sshll.u32 %s1205_s5, 4  ;;  %s1138_s6 = int_to_ptr.vmem [resolvable:$false] %s1137_s6 }
  0x41   : > { %983 = vmatprep.subr.bf16.mxu0 %v1082_v10  ;;  %s1139_s7 = scalar_lea.vmem %s1138_s6, 768  ;;  %p1140_p2 = scmp.lt.s32.totalorder %s1391_s28, %s1138_s6 }
  0x42   : > { %p1136_p12 = pneg %p1135_p10  ;;  %p1141_p3 = scmp.lt.s32.totalorder %s1139_s7, %s1133_s13 }
  0x44   : > { %984 = vmatpush3.bf16.msra.mxu0 %v1082_v10  ;;  %p1142_p4 = por %p1141_p3, %p1140_p2 }
  0x45   : > { %985 = vmatprep.subr.bf16.mxu0 %v1083_v26 }
  0x46   : > { %p1143_p7 = pnand %p1142_p4, %p1136_p12 }
  0x48   : > { %986 = vmatpush3.bf16.msra.mxu0 %v1083_v26  ;;  %v421_v26 = vld [vmem:[#allocation2 + $0x78] sm:$0x8] }
  0x49   : > { %987 = vmatprep.subr.bf16.mxu0 %v1084_v27 }
  0x4c   : > { %988 = vmatpush3.bf16.msra.mxu0 %v1084_v27  ;;  %v422_v27 = vunpack.c.l.bf16 %v421_v26 }
 0x112   : > { %v971_v17 = vpop.f32.mrb[0].mxu0 }
 0x113   : > { %v224_v18 = vpop.f32.mrb[1].mxu0  ;;  %v233_v20 = vadd.f32 %v971_v17, %v173_v16 }
 0x114   : > { %v972_v19 = vpop.f32.mrb[2].mxu0  ;;  %v225_v22 = vadd.f32 %v224_v18, %v173_v16 }
 0x115   : > { %v227_v21 = vpop.f32.mrb[3].mxu0  ;;  %v243_v25 = vpack.c.bf16 %v233_v20, %v233_v20 }
 0x116   : > { %v228_v23 = vadd.f32 %v227_v21, %v173_v16  ;;  %v1087_v16 = vld [vmem:[#allocation2 + $0x48] sm:$0xff]  }
 0x118   : > { %v242_v24 = vpack.c.bf16 %v228_v23, %v225_v22 }
 0x11a   : > { %977 = vmatprep.mubr.msk.bf16.mxu1 %vm262_vm2, %v242_v24 }
 0x11b   : > { %978 = vmatmul.mubr.msk.bf16.vlgmr.msra.gmra.mrb[0].mxu1 %vm262_vm2, %v243_v25 }
 0x11c   : > { %994 = vmatpush3.bf16.msra.mxu1 %v1085_v13 }
 0x11d   : > { %995 = vmatprep.subr.bf16.mxu1 %v1086_v14 }
 0x120   : > { %996 = vmatpush3.bf16.msra.mxu1 %v1086_v14 }
 0x121   : > { %1001 = vmatprep.subr.bf16.mxu1 %v1087_v16 }
 0x1ee   : > { %v979_v32 = vpop.f32.mrb[0].mxu1 }
 0x1ef   : > { %v312_v33 = vadd.f32 %v979_v32, %v249_v31  ;;  %v303_v34 = vpop.f32.mrb[1].mxu1 }
 0x1f0   : > { %v304_v35 = vadd.f32 %v303_v34, %v249_v31  ;;  %v980_v36 = vpop.f32.mrb[2].mxu1  ;;  %v468_v34 = vrot.slane %v422_v27, %v467_v28 }
 0x1f1   : > { %v306_v37 = vpop.f32.mrb[3].mxu1  ;;  %v319_v39 = vmax.f32 %v312_v33, 0.0  ;;  %v424_v33 = vunpack.c.l.bf16 %v423_v29 }
 0x1f2   : > { %v307_v38 = vadd.f32 %v306_v37, %v249_v31  ;;  %v317_v40 = vmax.f32 %v304_v35, 0.0 }
 0x1f3   : > { %v329_v43 = vpack.c.bf16 %v319_v39, %v319_v39 }
 0x1f4   : > { %v318_v41 = vmax.f32 %v307_v38, 0.0 }
 0x1f6   : > { %v328_v42 = vpack.c.bf16 %v318_v41, %v317_v40  ;;  %v475_v40 = vrot.slane %v424_v33, %v1313_v15 }
 0x1f8   : > { %989 = vmatprep.mubr.msk.bf16.mxu0 %vm354_vm3, %v328_v42 }
 0x1f9   : > { %990 = vmatmul.mubr.msk.bf16.vlgmr.msra.gmra.mrb[4].mxu0 %vm354_vm3, %v329_v43 }
 0x2cc   : > { %v991_v48 = vpop.f32.mrb[4].mxu0 }
 0x2cd   : > { %v411_v49 = vadd.f32 %v991_v48, %v233_v20  ;;  %v395_v50 = vpop.f32.mrb[5].mxu0 }
 0x2ce   : > { %v409_v51 = vadd.f32 %v395_v50, %v225_v22  ;;  %v992_v52 = vpop.f32.mrb[6].mxu0  ;;  %v1089_v50 = vld [vmem:[#allocation2 + $0x58] sm:$0xff]  }
 0x2cf   : > { %v1327_v53 = vadd.f32 %v417_v47, %v411_v49  ;;  %v398_v54 = vpop.f32.mrb[7].mxu0  ;;  %v1088_v49 = vld [vmem:[#allocation2 + $0x50] sm:$0xff]   ;;  %v485_v52 = vld [vmem:[#allocation2 + $0x7c] sm:$0x2] }
 0x2d0   : > { %v1329_v55 = vadd.f32 %v417_v47, %v409_v51  ;;  %v410_v56 = vadd.f32 %v398_v54, %v228_v23  ;;  %v1090_v51 = vld [vmem:[#allocation2 + $0x60] sm:$0xff]   ;;  %v486_v54 = vunpack.c.l.bf16 %v485_v52 }
 0x2d1   : > { %v431_v57 = vsel %vm262_vm2, %v1327_v53, 0.0 }
 0x2d2   : > { %v1333_v58 = vadd.f32 %v417_v47, %v410_v56  ;;  %432 = vadd.xlane.f32.xlu1 %v431_v57  ;;  %v425_v59 = vsel %vm262_vm2, %v1329_v55, 0.0  ;;  %v490_v56 = vrot.slane %v486_v54, %v1319_v30 }
 0x2d3   : > { %426 = vadd.xlane.f32.xlu0 %v425_v59 }
 0x2d4   : > { %v428_v60 = vsel %vm262_vm2, %v1333_v58, 0.0 }
 0x2d7   : > { %429 = vadd.xlane.f32.xlu0 %v428_v60 }
 0x35f   : > { %v433_v61 = vpop.xlane.xlu1 %432 }
 0x360   : > { %v437_v62 = vmul.f32 0.03125, %v433_v61  ;;  %v427_v63 = vpop.xlane.xlu0 %426 }
 0x361   : > { %v435_v0 = vmul.f32 0.03125, %v427_v63 }
 0x362   : > { %v440_v1 = vsub.f32 %v1327_v53, %v437_v62 }
 0x363   : > { %v438_v2 = vsub.f32 %v1329_v55, %v435_v0 }
 0x364   : > { %v430_v3 = vpop.xlane.xlu0 %429  ;;  %v443_v8 = vmul.f32 %v440_v1, %v440_v1 }
 0x365   : > { %v436_v4 = vmul.f32 0.03125, %v430_v3  ;;  %v441_v5 = vmul.f32 %v438_v2, %v438_v2 }
 0x366   : > { %v450_v10 = vsel %vm262_vm2, %v443_v8, 0.0 }
 0x367   : > { %v439_v6 = vsub.f32 %v1333_v58, %v436_v4  ;;  %v444_v7 = vsel %vm262_vm2, %v441_v5, 0.0 }
 0x368   : > { %445 = vadd.xlane.f32.xlu1 %v444_v7 }
 0x369   : > { %v442_v9 = vmul.f32 %v439_v6, %v439_v6 }
 0x36b   : > { %v447_v11 = vsel %vm262_vm2, %v442_v9, 0.0 }
 0x36c   : > { %451 = vadd.xlane.f32.xlu1 %v450_v10  ;;  %448 = vadd.xlane.f32.xlu0 %v447_v11 }
 0x3f5   : > { %v446_v17 = vpop.xlane.xlu1 %445 }
 0x3f6   : > { %v453_v18 = vmul.f32 0.03125, %v446_v17 }
 0x3f8   : > { %v456_v19 = vadd.f32 1e-05, %v453_v18 }
 0x3f9   : > { %v452_v20 = vpop.xlane.xlu1 %451  ;;  %v449_v21 = vpop.xlane.xlu0 %448 }
 0x3fa   : > { %1093 = vrsqrt.f32 %v456_v19  ;;  %v455_v22 = vmul.f32 0.03125, %v452_v20  ;;  %v454_v23 = vmul.f32 0.03125, %v449_v21 }
 0x3fc   : > { %v458_v24 = vadd.f32 1e-05, %v455_v22  ;;  %v457_v25 = vadd.f32 1e-05, %v454_v23 }
 0x3fe   : > { %1095 = vrsqrt.f32 %v458_v24 }
 0x3ff   : > { %1097 = vrsqrt.f32 %v457_v25 }
 0x404   : > { %v1094_v31 = vpop.eup %1093 }
 0x405   : > { %v462_v32 = vmul.f32 %v1094_v31, %v438_v2 }
 0x407   : > { %v469_v39 = vmul.f32 %v468_v34, %v462_v32 }
 0x408   : > { %v1096_v35 = vpop.eup %1095 }
 0x409   : > { %v1098_v36 = vpop.eup %1097  ;;  %v464_v37 = vmul.f32 %v1096_v35, %v440_v1  ;;  %v476_v44 = vadd.f32 %v475_v40, %v469_v39 }
 0x40a   : > { %v463_v38 = vmul.f32 %v1098_v36, %v439_v6  ;;  %v651_v6 = vld [vmem:[#allocation2 + $0x7c] sm:$0x4] }
 0x40b   : > { %v471_v41 = vmul.f32 %v468_v34, %v464_v37  ;;  %v652_v7 = vunpack.c.l.bf16 %v651_v6  ;;  %v1091_v37 = vld [vmem:[#allocation2 + $0x68] sm:$0xff]  }
 0x40c   : > { %v470_v42 = vmul.f32 %v468_v34, %v463_v38  ;;  %1013 = vmatprep.subr.bf16.mxu0 %v1091_v37  ;;  %v1092_v38 = vld [vmem:[#allocation2 + $0x70] sm:$0xff]  }
 0x40d   : > { %v478_v43 = vadd.f32 %v475_v40, %v471_v41  ;;  %v656_v8 = vrot.slane %v652_v7, %v416_v46  ;;  %1014 = vmatpush3.bf16.msra.mxu0 %v1091_v37 }
 0x40e   : > { %v477_v45 = vadd.f32 %v475_v40, %v470_v42  ;;  %1015 = vmatprep.subr.bf16.mxu0 %v1092_v38 }
 0x40f   : > { %v484_v47 = vpack.c.bf16 %v478_v43, %v478_v43 }
 0x410   : > { %v483_v48 = vpack.c.bf16 %v477_v45, %v476_v44 }
 0x411   : > { %1016 = vmatpush3.bf16.msra.mxu0 %v1092_v38 }
 0x412   : > { %997 = vmatprep.mubr.msk.bf16.mxu1 %vm262_vm2, %v483_v48 }
 0x413   : > { %998 = vmatmul.mubr.msk.bf16.vlgmr.msra.gmra.mrb[4].mxu1 %vm262_vm2, %v484_v47 }
 0x414   : > { %1002 = vmatpush3.bf16.msra.mxu1 %v1087_v16 }
 0x415   : > { %1003 = vmatprep.subr.bf16.mxu1 %v1088_v49 }
 0x418   : > { %1004 = vmatpush3.bf16.msra.mxu1 %v1088_v49  ;;  %v660_v49 = vld [vmem:[#allocation2 + $0x7c] sm:$0x8] }
 0x419   : > { %1005 = vmatprep.subr.bf16.mxu1 %v1089_v50 }
 0x41c   : > { %1006 = vmatpush3.bf16.msra.mxu1 %v1089_v50  ;;  %v661_v50 = vunpack.c.l.bf16 %v660_v49 }
 0x41d   : > { %1007 = vmatprep.subr.bf16.mxu1 %v1090_v51 }
 0x41e   : > { %v706_v54 = vrot.slane %v661_v50, %v467_v28  ;;  %v724_v28 = vunpack.c.l.bf16 %v723_v12 }
 0x420   : > { %1008 = vmatpush3.bf16.msra.mxu1 %v1090_v51  ;;  %v662_v51 = vld [vmem:[#allocation2 + $0x80] sm:$0x1] }
 0x421   : > { %v663_v52 = vunpack.c.l.bf16 %v662_v51 }
 0x4e6   : > { %v999_v57 = vpop.f32.mrb[4].mxu1 }
 0x4e7   : > { %v552_v59 = vadd.f32 %v999_v57, %v490_v56  ;;  %v543_v60 = vpop.f32.mrb[5].mxu1 }
 0x4e8   : > { %v544_v61 = vadd.f32 %v543_v60, %v490_v56  ;;  %v1000_v62 = vpop.f32.mrb[6].mxu1 }
 0x4e9   : > { %v546_v63 = vpop.f32.mrb[7].mxu1  ;;  %v559_v1 = vmax.f32 %v552_v59, 0.0  ;;  %v713_v62 = vrot.slane %v663_v52, %v1313_v15 }
 0x4ea   : > { %v547_v0 = vadd.f32 %v546_v63, %v490_v56  ;;  %v557_v2 = vmax.f32 %v544_v61, 0.0 }
 0x4eb   : > { %v569_v5 = vpack.c.bf16 %v559_v1, %v559_v1 }
 0x4ec   : > { %v558_v3 = vmax.f32 %v547_v0, 0.0 }
 0x4ee   : > { %v568_v4 = vpack.c.bf16 %v558_v3, %v557_v2 }
 0x4f0   : > { %1009 = vmatprep.mubr.msk.bf16.mxu1 %vm354_vm3, %v568_v4 }
 0x4f1   : > { %1010 = vmatmul.mubr.msk.bf16.vlgmr.msra.gmra.mrb[8].mxu1 %vm354_vm3, %v569_v5 }
 0x5c4   : > { %v1011_v9 = vpop.f32.mrb[8].mxu1 }
 0x5c5   : > { %v650_v10 = vadd.f32 %v1011_v9, %v1327_v53  ;;  %v634_v11 = vpop.f32.mrb[9].mxu1 }
 0x5c6   : > { %v648_v13 = vadd.f32 %v634_v11, %v1329_v55  ;;  %v1012_v14 = vpop.f32.mrb[10].mxu1 }
 0x5c7   : > { %v659_v16 = vadd.f32 %v656_v8, %v650_v10  ;;  %v637_v17 = vpop.f32.mrb[11].mxu1 }
 0x5c8   : > { %v657_v18 = vadd.f32 %v656_v8, %v648_v13  ;;  %v649_v19 = vadd.f32 %v637_v17, %v1333_v58 }
 0x5c9   : > { %797 = vst.msk [vmem:[%s1362_s25 + $0x10] sm:$0xff] %vm262_vm2, %v659_v16  ;;  %v670_v58 = vsel %vm262_vm2, %v659_v16, 0.0 }
 0x5ca   : > { %795 = vst.msk [vmem:[%s1362_s25] sm:$0xff] %vm262_vm2, %v657_v18  ;;  %v658_v46 = vadd.f32 %v656_v8, %v649_v19  ;;  %v664_v53 = vsel %vm262_vm2, %v657_v18, 0.0  ;;  %v728_v8 = vrot.slane %v724_v28, %v1319_v30 }
 0x5cb   : > { %665 = vadd.xlane.f32.xlu0 %v664_v53 }
 0x5cc   : > { %796 = vst.msk [vmem:[%s1362_s25 + $0x8] sm:$0xff] %vm262_vm2, %v658_v46  ;;  %v667_v55 = vsel %vm262_vm2, %v658_v46, 0.0 }
 0x5cd   : > { %668 = vadd.xlane.f32.xlu1 %v667_v55 }
 0x5cf   : > { %671 = vadd.xlane.f32.xlu0 %v670_v58 }
 0x658   : > { %v666_v20 = vpop.xlane.xlu0 %665 }
 0x659   : > { %v673_v21 = vmul.f32 0.03125, %v666_v20 }
 0x65a   : > { %v669_v22 = vpop.xlane.xlu1 %668 }
 0x65b   : > { %v676_v23 = vsub.f32 %v657_v18, %v673_v21  ;;  %v674_v24 = vmul.f32 0.03125, %v669_v22 }
 0x65c   : > { %v672_v25 = vpop.xlane.xlu0 %671 }
 0x65d   : > { %v677_v26 = vsub.f32 %v658_v46, %v674_v24  ;;  %v675_v27 = vmul.f32 0.03125, %v672_v25  ;;  %v679_v29 = vmul.f32 %v676_v23, %v676_v23 }
 0x65f   : > { %v678_v31 = vsub.f32 %v659_v16, %v675_v27  ;;  %v682_v32 = vsel %vm262_vm2, %v679_v29, 0.0  ;;  %v680_v33 = vmul.f32 %v677_v26, %v677_v26 }
 0x660   : > { %683 = vadd.xlane.f32.xlu1 %v682_v32 }
 0x661   : > { %v685_v34 = vsel %vm262_vm2, %v680_v33, 0.0  ;;  %v681_v35 = vmul.f32 %v678_v31, %v678_v31 }
 0x662   : > { %686 = vadd.xlane.f32.xlu0 %v685_v34 }
 0x663   : > { %v688_v36 = vsel %vm262_vm2, %v681_v35, 0.0 }
 0x664   : > { %689 = vadd.xlane.f32.xlu1 %v688_v36 }
 0x6ed   : > { %v684_v39 = vpop.xlane.xlu1 %683 }
 0x6ee   : > { %v691_v40 = vmul.f32 0.03125, %v684_v39 }
 0x6ef   : > { %v687_v41 = vpop.xlane.xlu0 %686 }
 0x6f0   : > { %v694_v42 = vadd.f32 1e-05, %v691_v40  ;;  %v692_v43 = vmul.f32 0.03125, %v687_v41 }
 0x6f1   : > { %v690_v44 = vpop.xlane.xlu1 %689 }
 0x6f2   : > { %1099 = vrsqrt.f32 %v694_v42  ;;  %v695_v45 = vadd.f32 1e-05, %v692_v43  ;;  %v693_v47 = vmul.f32 0.03125, %v690_v44 }
 0x6f4   : > { %1101 = vrsqrt.f32 %v695_v45  ;;  %v696_v48 = vadd.f32 1e-05, %v693_v47 }
 0x6f6   : > { %1103 = vrsqrt.f32 %v696_v48 }
 0x6fc   : > { %v1100_v56 = vpop.eup %1099 }
 0x6fd   : > { %v700_v57 = vmul.f32 %v1100_v56, %v676_v23 }
 0x6fe   : > { %v1102_v59 = vpop.eup %1101 }
 0x6ff   : > { %v701_v60 = vmul.f32 %v1102_v59, %v677_v26  ;;  %v707_v61 = vmul.f32 %v706_v54, %v700_v57 }
 0x700   : > { %v1104_v63 = vpop.eup %1103 }
 0x701   : > { %v702_v0 = vmul.f32 %v1104_v63, %v678_v31  ;;  %v708_v1 = vmul.f32 %v706_v54, %v701_v60  ;;  %v714_v2 = vadd.f32 %v713_v62, %v707_v61 }
 0x703   : > { %v715_v3 = vadd.f32 %v713_v62, %v708_v1  ;;  %v709_v4 = vmul.f32 %v706_v54, %v702_v0 }
 0x705   : > { %v721_v5 = vpack.c.bf16 %v715_v3, %v714_v2  ;;  %v716_v6 = vadd.f32 %v713_v62, %v709_v4 }
 0x707   : > { %1017 = vmatprep.mubr.msk.bf16.mxu0 %vm262_vm2, %v721_v5  ;;  %v722_v7 = vpack.c.bf16 %v716_v6, %v716_v6 }
 0x709   : > { %1018 = vmatmul.mubr.msk.bf16.vlgmr.msra.gmra.mrb[8].mxu0 %vm262_vm2, %v722_v7 }
 0x7dc   : > { %v1019_v15 = vpop.f32.mrb[8].mxu0 }
 0x7dd   : > { %v781_v9 = vpop.f32.mrb[9].mxu0  ;;  %v790_v16 = vadd.f32 %v1019_v15, %v728_v8 }
 0x7de   : > { %v782_v10 = vadd.f32 %v781_v9, %v728_v8  ;;  %v1020_v11 = vpop.f32.mrb[10].mxu0 }
 0x7df   : > { %v784_v13 = vpop.f32.mrb[11].mxu0 }
 0x7e0   : > { %v785_v14 = vadd.f32 %v784_v13, %v728_v8  ;;  %801 = vrot.lane.b32.xlu0 %v782_v10, %s1204_s26 }
 0x7e2   : > { %803 = vrot.lane.b32.xlu1 %v785_v14, %s1204_s26 }
 0x7e6   : > { %805 = vrot.lane.b32.xlu1 %v790_v16, %s1204_s26 }
 0x852   : > { %v802_v17 = vpop.permute.xlu0 %801 }
 0x853   : > { %811 = vst.msk [vmem:[%s1362_s25] sm:$0xff] %vm810_vm4, %v802_v17 }
 0x854   : > { %v804_v30 = vpop.permute.xlu1 %803 }
 0x855   : > { %812 = vst.msk [vmem:[%s1362_s25 + $0x8] sm:$0xff] %vm810_vm4, %v804_v30 }
 0x858   : > { %v806_v18 = vpop.permute.xlu1 %805 }
 0x859   : > { %813 = vst.msk [vmem:[%s1362_s25 + $0x10] sm:$0xff] %vm810_vm4, %v806_v18 }
 0x85a   : > { %1146 = shalt.err (!%p1143_p7)
}
 0x85b   : > { %s1147_s8 = scalar_lea.hbm %s1389_s3, 384  ;;  %s1151_s17 = scalar_lea.hbm %s1439_s2, 768 }
 0x85c   : > { %p1148_p8 = scmp.ne.s32.totalorder %s1389_s3, %s1147_s8  ;;  %p1152_p1 = scmp.lt.u32.totalorder %s1389_s3, %s1439_s2 }
 0x85d   : > { %p1153_p0 = scmp.lt.u32.totalorder %s1151_s17, %s1147_s8  ;;  %p1155_p6 = scmp.lt.u32.totalorder %s1147_s8, %s1389_s3 }
 0x85e   : > { %p1149_p11 = pnand %p1148_p8, %p1450_p9 }
 0x85f   : > { %p1154_p5 = por %p1153_p0, %p1152_p1 }
 0x860   : > { %p1150_p13 = pneg %p1149_p11 }
 0x861   : > { %p1156_p10 = por %p1155_p6, %p1154_p5 }
 0x863   : > { %p1157_p12 = pnand %p1156_p10, %p1150_p13 }
 0x865   : > { %1160 = shalt.err (!%p1157_p12)
}
 0x866   : > { %s1206_s21 = smov 128   ;;  %s1207_s24 = smov 8  }
 0x867   : > { %1027 = dma.vmem_to_hbm [thread:$0]  (%p1450_p9), %s1391_s28, 384, %s1389_s3, %s1396_s4, %s1206_s21, %s1206_s21, %s1207_s24  }
 0x868 PF: > { %p1039_p2 = scmp.ge.s32.totalorder %s1199_s12, 2  ;;  %s843_s25 = sand.u32 1, %s1187_s9  }
 0x869   : > { %p1451_p3 = scmp.ne.s32.totalorder %s1444_s20, 0  ;;  %s844_s26 = scalar_lea.sflag [#allocation4], %s843_s25 }
 0x86b   : > { %p1034_p4 = pnand %p1039_p2, %p1451_p3 }
 0x86d   : > { %1182 = dma.done.wait (!%p1034_p4), %s844_s26, 384  }
 0x86e   : > { %1184 = vsyncadd (!%p1034_p4), %s844_s26, 4294966912  ;;  %p13_p7 = scmp.ge.s32.totalorder %s1248_s15, 4   ;;  %s1452_s9 = smov %s1191_s10 }
 0x86f   : > { %s1453_s10 = smov %s1195_s11  ;;  %s1454_s11 = smov %s1259_s18 }
 0x870   : > { %s1455_s12 = smov %s1248_s15  ;;  %15 = sbr.rel (!%p13_p7) target bundleno = 4 (0x4), region = 68 }
 0x877   :  { %849 = vsyncpa [#allocation3], 1 }
 0x878   :  { %851 = vsyncpa [#allocation3 + $0x1], 1 }
 0x879   :  { %852 = vsyncpa [#allocation4], 1 }
 0x87a   :  { %854 = vsyncpa [#allocation4 + $0x1], 1 }

</bundles_post_ra>
